<compile_context>
chip_gen: v7x
topology: tpu7x:2x2x1
jax: 0.10.0
libtpu: 0.0.40
codegen_flags: <defaults>
</compile_context>

<pallas_src>
import jax
import jax.numpy as jnp
from jax import lax
from jax.experimental import pallas as pl
from jax.experimental.pallas import tpu as pltpu


H1 = 128
H2 = 64
TILE_B_CAP = 1024  # cap batch tile; keeps f32 intermediates + spills small on all gens


def _round_up(n, m):
    return -(-n // m) * m


def _pick_tile_b(batch, cap=TILE_B_CAP):
    """Batch-adaptive lane tile: multiple of 128, <= cap, and >= 2 tiles when
    the batch is big enough (so v7x can use both TensorCores)."""
    rounded = _round_up(batch, 128)
    if rounded <= 128:
        return 128
    half = _round_up(-(-rounded // 2), 128)
    return max(128, min(cap, half))


def dqn_kernel(x_ref, w1_ref, b1_ref, w2_ref, b2_ref, w3_ref, b3_ref, oT_ref):
    x = x_ref[...]                                                      # (TB, S)
    # h1^T = W1 @ x^T : contract W1's in-dim (axis 1) with x's feature dim (axis 1)
    h1 = lax.dot_general(
        w1_ref[...], x,
        dimension_numbers=(((1,), (1,)), ((), ())),
        preferred_element_type=jnp.float32,
    )                                                                   # (128, TB)
    h1 = jnp.maximum(h1 + b1_ref[...], 0.0)
    h2 = jnp.dot(w2_ref[...], h1, preferred_element_type=jnp.float32)   # (64, TB)
    h2 = jnp.maximum(h2 + b2_ref[...], 0.0)
    q = jnp.dot(w3_ref[...], h2, preferred_element_type=jnp.float32)    # (A, TB)
    oT_ref[...] = (q + b3_ref[...]).astype(oT_ref.dtype)


def dqn_forward(x, params):
    """x: (batch, state_dim) f32. params in PyTorch-native layout:
       w1 (128, S), b1 (128, 1), w2 (64, 128), b2 (64, 1), w3 (A, 64), b3 (A, 1).
       Returns (batch, action_dim) f32."""
    w1, b1, w2, b2, w3, b3 = params
    batch, state_dim = x.shape
    action_dim = w3.shape[0]

    tile_b = _pick_tile_b(batch)
    n_tiles = pl.cdiv(batch, tile_b)
    padded = n_tiles * tile_b

    weight_bytes = 4 * sum(int(p.size) for p in params)
    cost = pl.CostEstimate(
        flops=2 * padded * (state_dim * H1 + H1 * H2 + H2 * action_dim),
        transcendentals=0,
        bytes_accessed=weight_bytes + 4 * padded * (state_dim + action_dim),
    )

    qT = pl.pallas_call(
        dqn_kernel,
        out_shape=jax.ShapeDtypeStruct((action_dim, padded), jnp.float32),
        grid_spec=pltpu.PrefetchScalarGridSpec(
            num_scalar_prefetch=0,
            grid=(n_tiles,),
            in_specs=[
                pl.BlockSpec((tile_b, state_dim), lambda i: (i, 0)),   # x tile (no wrapper transpose)
                pl.BlockSpec((H1, state_dim), lambda i: (0, 0)),       # W1 (resident)
                pl.BlockSpec((H1, 1), lambda i: (0, 0)),               # b1
                pl.BlockSpec((H2, H1), lambda i: (0, 0)),              # W2
                pl.BlockSpec((H2, 1), lambda i: (0, 0)),               # b2
                pl.BlockSpec((action_dim, H2), lambda i: (0, 0)),      # W3
                pl.BlockSpec((action_dim, 1), lambda i: (0, 0)),       # b3
            ],
            out_specs=pl.BlockSpec((action_dim, tile_b), lambda i: (0, i)),
        ),
        compiler_params=pltpu.CompilerParams(
            dimension_semantics=("parallel",),  # shards batch tiles across TCs on v7x
        ),
        cost_estimate=cost,
    )(x, w1, b1, w2, b2, w3, b3)

    return qT[:, :batch].T                                             # (batch, A)


def init_dqn_params(key, state_dim, action_dim):
    """PyTorch nn.Linear default init U(-1/sqrt(fan_in), 1/sqrt(fan_in)),
    kept in PyTorch-native (out, in) layout; biases stored as (out, 1)."""
    def linear(k, fan_in, fan_out):
        kw, kb = jax.random.split(k)
        bound = 1.0 / jnp.sqrt(jnp.float32(fan_in))
        w = jax.random.uniform(kw, (fan_out, fan_in), jnp.float32, -bound, bound)
        b = jax.random.uniform(kb, (fan_out, 1), jnp.float32, -bound, bound)
        return w, b

    k1, k2, k3 = jax.random.split(key, 3)
    w1, b1 = linear(k1, state_dim, H1)
    w2, b2 = linear(k2, H1, H2)
    w3, b3 = linear(k3, H2, action_dim)
    return (w1, b1, w2, b2, w3, b3)


def dqn_reference(x, params):
    """Pure-JAX reference (matches torch: y = x @ W.T + b)."""
    w1, b1, w2, b2, w3, b3 = params
    h1 = jnp.maximum(x @ w1.T + b1[:, 0], 0.0)
    h2 = jnp.maximum(h1 @ w2.T + b2[:, 0], 0.0)
    return h2 @ w3.T + b3[:, 0]


if __name__ == "__main__":
    state_dim = 4     # CartPole observation dim
    action_dim = 2    # CartPole actions
    batch = 200       # not a multiple of 128 -> exercises partial-tile handling (2 tiles)

    key = jax.random.PRNGKey(0)
    k_params, k_x = jax.random.split(key)
    params = init_dqn_params(k_params, state_dim, action_dim)
    x = jax.random.normal(k_x, (batch, state_dim), jnp.float32)

    q = dqn_forward(x, params)
    q = jax.block_until_ready(q)

    q_ref = dqn_reference(x, params)
    assert q.shape == (batch, action_dim)
    assert jnp.allclose(q, q_ref, atol=1e-4, rtol=1e-4), "mismatch vs reference"

    # Also exercise a small (single-tile) batch, as used at action-selection time.
    x_small = jax.random.normal(jax.random.PRNGKey(1), (2, state_dim), jnp.float32)
    q_small = jax.block_until_ready(dqn_forward(x_small, params))
    assert jnp.allclose(q_small, dqn_reference(x_small, params), atol=1e-4, rtol=1e-4)

    print("KERNEL_OK")
</pallas_src>

<mosaic_0001>
module attributes {stable_mosaic.version = 11 : i64} {
  func.func @dqn_kernel(%arg0: i32, %arg1: memref<128x4xf32, #tpu.memory_space<vmem>>, %arg2: memref<128x4xf32, #tpu.memory_space<vmem>>, %arg3: memref<128x1xf32, #tpu.memory_space<vmem>>, %arg4: memref<64x128xf32, #tpu.memory_space<vmem>>, %arg5: memref<64x1xf32, #tpu.memory_space<vmem>>, %arg6: memref<2x64xf32, #tpu.memory_space<vmem>>, %arg7: memref<2x1xf32, #tpu.memory_space<vmem>>, %arg8: memref<2x128xf32, #tpu.memory_space<vmem>>) attributes {dimension_semantics = [#tpu.dimension_semantics<parallel>], iteration_bounds = array<i64: 2>, scalar_prefetch = 0 : i64, scratch_operands = 0 : i64, tpu.core_type = #tpu.core_type<tc>, window_params = [{transform_indices = @transform_0, window_bounds = array<i64: 128, 4>}, {pipeline_mode = #tpu.pipeline_mode<synchronous>, transform_indices = @transform_1, window_bounds = array<i64: 128, 4>}, {pipeline_mode = #tpu.pipeline_mode<synchronous>, transform_indices = @transform_2, window_bounds = array<i64: 128, 1>}, {pipeline_mode = #tpu.pipeline_mode<synchronous>, transform_indices = @transform_3, window_bounds = array<i64: 64, 128>}, {pipeline_mode = #tpu.pipeline_mode<synchronous>, transform_indices = @transform_4, window_bounds = array<i64: 64, 1>}, {pipeline_mode = #tpu.pipeline_mode<synchronous>, transform_indices = @transform_5, window_bounds = array<i64: 2, 64>}, {pipeline_mode = #tpu.pipeline_mode<synchronous>, transform_indices = @transform_6, window_bounds = array<i64: 2, 1>}, {transform_indices = @transform_7, window_bounds = array<i64: 2, 128>}]} {
    %c0 = arith.constant 0 : index
    %c0_0 = arith.constant 0 : index
    %0 = vector.load %arg1[%c0, %c0_0] : memref<128x4xf32, #tpu.memory_space<vmem>>, vector<128x4xf32>
    %c0_1 = arith.constant 0 : index
    %c0_2 = arith.constant 0 : index
    %1 = vector.load %arg2[%c0_1, %c0_2] : memref<128x4xf32, #tpu.memory_space<vmem>>, vector<128x4xf32>
    %cst = arith.constant dense<0.000000e+00> : vector<128x128xf32>
    %2 = tpu.matmul %1, %0, %cst {dimension_numbers = #tpu.dot_dimension_numbers<[1], [1], [0], [0], [0, 0, 1, 0], [], []>} : vector<128x4xf32>, vector<128x4xf32>, vector<128x128xf32> -> vector<128x128xf32>
    %c0_3 = arith.constant 0 : index
    %c0_4 = arith.constant 0 : index
    %3 = vector.load %arg3[%c0_3, %c0_4] : memref<128x1xf32, #tpu.memory_space<vmem>>, vector<128x1xf32>
    %4 = vector.broadcast %3 : vector<128x1xf32> to vector<128x128xf32>
    %5 = arith.addf %2, %4 : vector<128x128xf32>
    %cst_5 = arith.constant 0.000000e+00 : f32
    %6 = vector.broadcast %cst_5 : f32 to vector<128x128xf32>
    %7 = arith.maximumf %5, %6 : vector<128x128xf32>
    %c0_6 = arith.constant 0 : index
    %c0_7 = arith.constant 0 : index
    %8 = vector.load %arg4[%c0_6, %c0_7] : memref<64x128xf32, #tpu.memory_space<vmem>>, vector<64x128xf32>
    %cst_8 = arith.constant dense<0.000000e+00> : vector<64x128xf32>
    %9 = tpu.matmul %8, %7, %cst_8 {dimension_numbers = #tpu.dot_dimension_numbers<[1], [0], [0], [1], [0, 0, 1, 1], [], []>} : vector<64x128xf32>, vector<128x128xf32>, vector<64x128xf32> -> vector<64x128xf32>
    %c0_9 = arith.constant 0 : index
    %c0_10 = arith.constant 0 : index
    %10 = vector.load %arg5[%c0_9, %c0_10] : memref<64x1xf32, #tpu.memory_space<vmem>>, vector<64x1xf32>
    %11 = vector.broadcast %10 : vector<64x1xf32> to vector<64x128xf32>
    %12 = arith.addf %9, %11 : vector<64x128xf32>
    %cst_11 = arith.constant 0.000000e+00 : f32
    %13 = vector.broadcast %cst_11 : f32 to vector<64x128xf32>
    %14 = arith.maximumf %12, %13 : vector<64x128xf32>
    %c0_12 = arith.constant 0 : index
    %c0_13 = arith.constant 0 : index
    %15 = vector.load %arg6[%c0_12, %c0_13] : memref<2x64xf32, #tpu.memory_space<vmem>>, vector<2x64xf32>
    %cst_14 = arith.constant dense<0.000000e+00> : vector<2x128xf32>
    %16 = tpu.matmul %15, %14, %cst_14 {dimension_numbers = #tpu.dot_dimension_numbers<[1], [0], [0], [1], [0, 0, 1, 1], [], []>} : vector<2x64xf32>, vector<64x128xf32>, vector<2x128xf32> -> vector<2x128xf32>
    %c0_15 = arith.constant 0 : index
    %c0_16 = arith.constant 0 : index
    %17 = vector.load %arg7[%c0_15, %c0_16] : memref<2x1xf32, #tpu.memory_space<vmem>>, vector<2x1xf32>
    %18 = vector.broadcast %17 : vector<2x1xf32> to vector<2x128xf32>
    %19 = arith.addf %16, %18 : vector<2x128xf32>
    %c0_17 = arith.constant 0 : index
    %c0_18 = arith.constant 0 : index
    %20 = vector.load %arg8[%c0_17, %c0_18] : memref<2x128xf32, #tpu.memory_space<vmem>>, vector<2x128xf32>
    tpu.vector_store %arg8[%c0_17, %c0_18], %19 {strides = array<i32>} : memref<2x128xf32, #tpu.memory_space<vmem>>, vector<2x128xf32>,
    return
  }
  func.func @transform_0(%arg0: i32) -> (i32, i32) {
    %c0_i32 = arith.constant 0 : i32
    %c0_i32_0 = arith.constant 0 : i32
    return %arg0, %c0_i32 : i32, i32
  }
  func.func @transform_1(%arg0: i32) -> (i32, i32) {
    %c0_i32 = arith.constant 0 : i32
    %c0_i32_0 = arith.constant 0 : i32
    %c0_i32_1 = arith.constant 0 : i32
    return %c0_i32, %c0_i32_0 : i32, i32
  }
  func.func @transform_2(%arg0: i32) -> (i32, i32) {
    %c0_i32 = arith.constant 0 : i32
    %c0_i32_0 = arith.constant 0 : i32
    %c0_i32_1 = arith.constant 0 : i32
    return %c0_i32, %c0_i32_0 : i32, i32
  }
  func.func @transform_3(%arg0: i32) -> (i32, i32) {
    %c0_i32 = arith.constant 0 : i32
    %c0_i32_0 = arith.constant 0 : i32
    %c0_i32_1 = arith.constant 0 : i32
    return %c0_i32, %c0_i32_0 : i32, i32
  }
  func.func @transform_4(%arg0: i32) -> (i32, i32) {
    %c0_i32 = arith.constant 0 : i32
    %c0_i32_0 = arith.constant 0 : i32
    %c0_i32_1 = arith.constant 0 : i32
    return %c0_i32, %c0_i32_0 : i32, i32
  }
  func.func @transform_5(%arg0: i32) -> (i32, i32) {
    %c0_i32 = arith.constant 0 : i32
    %c0_i32_0 = arith.constant 0 : i32
    %c0_i32_1 = arith.constant 0 : i32
    return %c0_i32, %c0_i32_0 : i32, i32
  }
  func.func @transform_6(%arg0: i32) -> (i32, i32) {
    %c0_i32 = arith.constant 0 : i32
    %c0_i32_0 = arith.constant 0 : i32
    %c0_i32_1 = arith.constant 0 : i32
    return %c0_i32, %c0_i32_0 : i32, i32
  }
  func.func @transform_7(%arg0: i32) -> (i32, i32) {
    %c0_i32 = arith.constant 0 : i32
    %c0_i32_0 = arith.constant 0 : i32
    return %c0_i32, %arg0 : i32, i32
  }
}

</mosaic_0001>

<bundles_post_ra>
// kernel: tpu_custom_call.1
= control target key start
LH: loop header
LB: loop body
LE: loop exit
PB: predicated region body
PF: predicated region fallthrough
CT: control target
= control target key end

     0   :  { %12 = vsyncpa [#allocation3], 0  ;;  %s1804_s0 = inlined_call_operand.vmem [shape: f32[200,4], index: 0, kind: input, shape index: {}]   ;;  %s1805_s1 = inlined_call_operand.vmem [shape: f32[128,4], index: 1, kind: input, shape index: {}]   ;;  %s1806_s2 = inlined_call_operand.vmem [shape: f32[128,1], index: 2, kind: input, shape index: {}]   ;;  %s1807_s3 = inlined_call_operand.vmem [shape: f32[64,128], index: 3, kind: input, shape index: {}]   ;;  %s1808_s4 = inlined_call_operand.vmem [shape: f32[64,1], index: 4, kind: input, shape index: {}]   ;;  %s1809_s5 = inlined_call_operand.vmem [shape: f32[2,64], index: 5, kind: input, shape index: {}]   ;;  %s1810_s6 = inlined_call_operand.vmem [shape: f32[2,1], index: 6, kind: input, shape index: {}]   ;;  %s1811_s7 = inlined_call_operand.hbm [shape: f32[2,256], index: 7, kind: output, shape index: {}]  }
   0x1   :  { %14 = vsyncpa [#allocation3 + $0x1], 0  ;;  %s1483_s24 = smov 0   ;;  %s1485_s25 = smov 0  }
   0x2   :  { %s1487_s26 = smov 0   ;;  %s1489_s27 = smov 0  }
   0x3 LB: > { %s1504_s28 = sadd.s32 4294967295, %s1436_s27   ;;  %s1009_s29 = sadd.s32 4294967294, %s1436_s27   ;;  %s1436_s27 = sphi %s1489_s27, %s1819_s27   ;;  %s1432_s26 = sphi %s1487_s26, %s1818_s26   ;;  %s1428_s25 = sphi %s1485_s25, %s1817_s25   ;;  %s1424_s24 = sphi %s1483_s24, %s1816_s24  }
   0x4   : > { %s1508_s30 = sadd.s32 1, %s1436_s27   ;;  %s179_s8 = sadd.s32 1, %s1432_s26 }
   0x5   : > { %s176_s9 = ssub.s32 %s1436_s27, %s1508_s30  ;;  %p189_p0 = scmp.ne.s32.totalorder %s1432_s26, %s1428_s25 }
   0x6   : > { %p177_p1 = scmp.eq.s32.totalorder %s176_s9, 0  ;;  %p190_p2 = scmp.eq.s32.totalorder %s1504_s28, 1 }
   0x7   : > { %p195_p3 = scmp.ne.s32.totalorder %s1428_s25, %s1424_s24  ;;  %p196_p4 = scmp.eq.s32.totalorder %s1009_s29, 1 }
   0x8   : > { %s1519_s10 = scalar_select %p177_p1, %s1432_s26, %s179_s8  }
   0x9   : > { %p1521_p5 = por %p190_p2, %p189_p0  ;;  %p1525_p6 = por %p196_p4, %p195_p3 }
   0xa   : > { %p1012_p7 = scmp.ge.s32.totalorder %s1436_s27, 1  ;;  %p249_p8 = scmp.lt.s32.totalorder %s1436_s27, 3 }
   0xc   : > { %p250_p9 = pnand %p1012_p7, %p249_p8 }
   0xd   : > { %s1014_s13 = sshll.u32 (!%p250_p9), %s1504_s28, 4  ;;  %vm427_vm0 = vcmask (!%p250_p9), 31744   ;;  %v315_v0 = vld [vmem:[%s1805_s1] sm:$0xff] (!%p250_p9)  ;;  %v1438_v1 = vmov (!%p250_p9), 0   ;;  %v332_v4 = vld [vmem:[%s1806_s2 + $0x8] sm:$0xff] (!%p250_p9)  ;;  %v333_v5 = vld [vmem:[%s1806_s2 + $0x10] sm:$0xff] (!%p250_p9) }
   0xe   : > { %253 = sbr.rel (%p250_p9) target bundleno = 804 (0x324), region = 48  ;;  %p290_p10 = scmp.lt.s32.totalorder (!%p250_p9), %s1014_s13, 24  ;;  %1150 = vmatprep.mubr.msk.f32.mxu0 (!%p250_p9), %vm427_vm0, %v315_v0  ;;  %1372 = vset.pattern.permute.xlu0 (!%p250_p9), %v1438_v1  ;;  %v331_v2 = vld [vmem:[%s1806_s2] sm:$0xff] (!%p250_p9)  ;;  %vm1546_vm1 = vmpackc.low (!%p250_p9), %vm427_vm0, %vm427_vm0  ;;  %v334_v13 = vld [vmem:[%s1806_s2 + $0x18] sm:$0xff] (!%p250_p9)  ;;  %vm1440_vm2 = vmmov (!%p250_p9), 0   ;;  %vm861_vm3 = vcmask (!%p250_p9), 523264  }
   0xf   : > { %1373 = vset.pattern.permute.xlu1 (!%p250_p9), %v1438_v1  ;;  %349 = vperm.xlu0 (!%p250_p9), %1372, %v331_v2   ;;  %v335_v12 = vld [vmem:[%s1806_s2 + $0x20] sm:$0xff] (!%p250_p9)  ;;  %v336_v16 = vld [vmem:[%s1806_s2 + $0x28] sm:$0xff] (!%p250_p9)  ;;  %v337_v17 = vld [vmem:[%s1806_s2 + $0x30] sm:$0xff] (!%p250_p9)  ;;  %s282_s23 = sand.u32 (!%p250_p9), 1, %s1428_s25   ;;  %s1050_s8 = sshll.u32 (!%p250_p9), %s1504_s28, 5 }
  0x10   : > { %359 = vperm.xlu1 (!%p250_p9), %1373, %v333_v5   ;;  %v338_v19 = vld [vmem:[%s1806_s2 + $0x38] sm:$0xff] (!%p250_p9)  ;;  %v339_v20 = vld [vmem:[%s1806_s2 + $0x40] sm:$0xff] (!%p250_p9)  ;;  %v340_v23 = vld [vmem:[%s1806_s2 + $0x48] sm:$0xff] (!%p250_p9)  ;;  %s1013_s29 = sshll.u32 (!%p250_p9), %s282_s23, 1  ;;  %s937_s17 = scalar_lea.sflag (!%p250_p9), [#allocation3], %s282_s23 }
  0x11   : > { %v341_v24 = vld [vmem:[%s1806_s2 + $0x50] sm:$0xff] (!%p250_p9)  ;;  %v342_v26 = vld [vmem:[%s1806_s2 + $0x58] sm:$0xff] (!%p250_p9)  ;;  %v343_v27 = vld [vmem:[%s1806_s2 + $0x60] sm:$0xff] (!%p250_p9)  ;;  %s284_s9 = scalar_lea.vmem (!%p250_p9), [#allocation2], %s1013_s29  ;;  %s1442_s28 = smov (!%p250_p9), [#allocation2]  }
  0x12   : > { %v344_v30 = vld [vmem:[%s1806_s2 + $0x68] sm:$0xff] (!%p250_p9)  ;;  %v345_v31 = vld [vmem:[%s1806_s2 + $0x70] sm:$0xff] (!%p250_p9)  ;;  %v346_v33 = vld [vmem:[%s1806_s2 + $0x78] sm:$0xff] (!%p250_p9)  ;;  %s1378_s19 = sshll.u32 (!%p250_p9), %s1442_s28, 4  ;;  %s1379_s19 = int_to_ptr.vmem [resolvable:$false] %s1378_s19 }
  0x13   : > { %354 = vperm.xlu0 (!%p250_p9), %1372, %v332_v4   ;;  %v693_v34 = vld [vmem:[%s1808_s4] sm:$0xff] (!%p250_p9)  ;;  %v694_v37 = vld [vmem:[%s1808_s4 + $0x8] sm:$0xff] (!%p250_p9)  ;;  %v695_v38 = vld [vmem:[%s1808_s4 + $0x10] sm:$0xff] (!%p250_p9)  ;;  %s1380_s20 = scalar_lea.vmem (!%p250_p9), %s1379_s19, 64 }
  0x14   : > { %364 = vperm.xlu1 (!%p250_p9), %1373, %v334_v13   ;;  %v696_v40 = vld [vmem:[%s1808_s4 + $0x18] sm:$0xff] (!%p250_p9)  ;;  %v697_v41 = vld [vmem:[%s1808_s4 + $0x20] sm:$0xff] (!%p250_p9)  ;;  %v698_v44 = vld [vmem:[%s1808_s4 + $0x28] sm:$0xff] (!%p250_p9) }
  0x15   : > { %s1821_s13 = smov (!%p290_p10, %s1014_s13), 24  ;;  %v699_v45 = vld [vmem:[%s1808_s4 + $0x30] sm:$0xff]  ;;  %v700_v47 = vld [vmem:[%s1808_s4 + $0x38] sm:$0xff]  ;;  %v855_v48 = vld [vmem:[%s1810_s6] sm:$0x3] }
  0x16   : > { %s1015_s16 = sshll.u32 %s1821_s13, 3  ;;  %v316_v52 = vld [vmem:[%s1805_s1 + $0x8] sm:$0xff]  ;;  %v317_v53 = vld [vmem:[%s1805_s1 + $0x10] sm:$0xff]  ;;  %v318_v54 = vld [vmem:[%s1805_s1 + $0x18] sm:$0xff]  ;;  %s950_s13 = sshll.u32 %s284_s9, 4  ;;  %s1764_s13 = int_to_ptr.vmem [resolvable:$true] %s950_s13 }
  0x17   : > { %s1542_s21 = scalar_lea.vmem %s1804_s0, %s1015_s16  ;;  %369 = vperm.xlu0 %1372, %v335_v12   ;;  %v319_v55 = vld [vmem:[%s1805_s1 + $0x20] sm:$0xff]  ;;  %v320_v56 = vld [vmem:[%s1805_s1 + $0x28] sm:$0xff]  ;;  %v321_v57 = vld [vmem:[%s1805_s1 + $0x30] sm:$0xff]  ;;  %s1762_s16 = scalar_lea.hbm %s1811_s7, %s1050_s8 }
  0x18   : > { %v299_v6 = vld [vmem:[%s1542_s21] sm:$0xff]  ;;  %v300_v7 = vld [vmem:[%s1542_s21 + $0x8] sm:$0xff]  ;;  %v301_v8 = vld [vmem:[%s1542_s21 + $0x10] sm:$0xff]  ;;  %374 = vperm.xlu1 %1373, %v336_v16   ;;  %s1374_s18 = scalar_lea.vmem %s1764_s13, 32  ;;  %p1381_p0 = scmp.lt.s32.totalorder %s1764_s13, %s1379_s19 }
  0x19   : > { %v1237_v9 = vpack.c.bf16 %v300_v7, %v299_v6  ;;  %v302_v10 = vld [vmem:[%s1542_s21 + $0x18] sm:$0xff]  ;;  %v303_v14 = vld [vmem:[%s1542_s21 + $0x20] sm:$0xff]  ;;  %v304_v15 = vld [vmem:[%s1542_s21 + $0x28] sm:$0xff]  ;;  %p1375_p11 = scmp.ne.s32.totalorder %s1764_s13, %s1374_s18  ;;  %p1382_p1 = scmp.lt.s32.totalorder %s1380_s20, %s1374_s18 }
  0x1a   : > { %v1243_v11 = vpack.c.bf16 %v302_v10, %v301_v8  ;;  %v1249_v18 = vpack.c.bf16 %v304_v15, %v303_v14  ;;  %v305_v21 = vld [vmem:[%s1542_s21 + $0x30] sm:$0xff]  ;;  %v306_v22 = vld [vmem:[%s1542_s21 + $0x38] sm:$0xff]  ;;  %v307_v28 = vld [vmem:[%s1542_s21 + $0x40] sm:$0xff] }
  0x1b   : > { %1239 = vmatprep.subr.msk.bf16.mxu0 %vm1546_vm1, %v1237_v9  ;;  %379 = vperm.xlu0 %1372, %v337_v17   ;;  %v1255_v25 = vpack.c.bf16 %v306_v22, %v305_v21  ;;  %v308_v29 = vld [vmem:[%s1542_s21 + $0x48] sm:$0xff]  ;;  %v309_v35 = vld [vmem:[%s1542_s21 + $0x50] sm:$0xff]  ;;  %v310_v36 = vld [vmem:[%s1542_s21 + $0x58] sm:$0xff]  ;;  %p1376_p12 = pnand %p1375_p11, %p1521_p5  ;;  %p1383_p2 = por %p1382_p1, %p1381_p0 }
  0x1c   : > { %1242 = vmatpush3.bf16.xpose.msk.msra.mxu0 %vm1546_vm1, %v1237_v9  ;;  %384 = vperm.xlu1 %1373, %v338_v19   ;;  %v1261_v32 = vpack.c.bf16 %v308_v29, %v307_v28  ;;  %v1267_v39 = vpack.c.bf16 %v310_v36, %v309_v35  ;;  %v311_v42 = vld [vmem:[%s1542_s21 + $0x60] sm:$0xff]  ;;  %v312_v43 = vld [vmem:[%s1542_s21 + $0x68] sm:$0xff]  ;;  %v313_v49 = vld [vmem:[%s1542_s21 + $0x70] sm:$0xff] }
  0x1d   : > { %1245 = vmatprep.subr.msk.bf16.mxu0 %vm1546_vm1, %v1243_v11  ;;  %v1273_v46 = vpack.c.bf16 %v312_v43, %v311_v42  ;;  %v314_v50 = vld [vmem:[%s1542_s21 + $0x78] sm:$0xff]  ;;  %v323_v59 = vld [vmem:[%s1805_s1 + $0x40] sm:$0xff]  ;;  %v324_v60 = vld [vmem:[%s1805_s1 + $0x48] sm:$0xff]  ;;  %p1377_p13 = pneg %p1376_p12 }
  0x1e   : > { %v1279_v51 = vpack.c.bf16 %v314_v50, %v313_v49  ;;  %v322_v58 = vld [vmem:[%s1805_s1 + $0x38] sm:$0xff]  ;;  %v325_v61 = vld [vmem:[%s1805_s1 + $0x50] sm:$0xff]  ;;  %v327_v63 = vld [vmem:[%s1805_s1 + $0x60] sm:$0xff] }
  0x1f   : > { %389 = vperm.xlu0 %1372, %v339_v20   ;;  %v326_v62 = vld [vmem:[%s1805_s1 + $0x58] sm:$0xff]  ;;  %v328_v0 = vld [vmem:[%s1805_s1 + $0x68] sm:$0xff]  ;;  %v329_v1 = vld [vmem:[%s1805_s1 + $0x70] sm:$0xff]  ;;  %p1384_p3 = pnand %p1383_p2, %p1377_p13 }
  0x20   : > { %394 = vperm.xlu1 %1373, %v340_v23   ;;  %v330_v2 = vld [vmem:[%s1805_s1 + $0x78] sm:$0xff]  ;;  %v685_v3 = vld [vmem:[%s1807_s3] sm:$0xff] }
  0x21   : > { %1206 = vmatprep.mubr.f32.mxu1 %v685_v3 }
  0x23   : > { %399 = vperm.xlu0 %1372, %v341_v24  }
  0x24   : > { %1248 = vmatpush3.bf16.xpose.msk.msra.mxu0 %vm1546_vm1, %v1243_v11  ;;  %404 = vperm.xlu1 %1373, %v342_v26  }
  0x25   : > { %1251 = vmatprep.subr.msk.bf16.mxu0 %vm1546_vm1, %v1249_v18 }
  0x27   : > { %409 = vperm.xlu0 %1372, %v343_v27  }
  0x28   : > { %414 = vperm.xlu1 %1373, %v344_v30  }
  0x2b   : > { %419 = vperm.xlu0 %1372, %v345_v31  }
  0x2c   : > { %1254 = vmatpush3.bf16.xpose.msk.msra.mxu0 %vm1546_vm1, %v1249_v18  ;;  %424 = vperm.xlu1 %1373, %v346_v33  }
  0x2d   : > { %1257 = vmatprep.subr.msk.bf16.mxu0 %vm1546_vm1, %v1255_v25 }
  0x2f   : > { %703 = vperm.xlu0 %1372, %v693_v34  }
  0x30   : > { %708 = vperm.xlu1 %1373, %v694_v37  }
  0x33   : > { %713 = vperm.xlu0 %1372, %v695_v38  }
  0x34   : > { %1260 = vmatpush3.bf16.xpose.msk.msra.mxu0 %vm1546_vm1, %v1255_v25  ;;  %718 = vperm.xlu1 %1373, %v696_v40  }
  0x35   : > { %1263 = vmatprep.subr.msk.bf16.mxu0 %vm1546_vm1, %v1261_v32 }
  0x37   : > { %723 = vperm.xlu0 %1372, %v697_v41  }
  0x38   : > { %728 = vperm.xlu1 %1373, %v698_v44  }
  0x3b   : > { %733 = vperm.xlu0 %1372, %v699_v45  }
  0x3c   : > { %1266 = vmatpush3.bf16.xpose.msk.msra.mxu0 %vm1546_vm1, %v1261_v32  ;;  %738 = vperm.xlu1 %1373, %v700_v47  }
  0x3d   : > { %1269 = vmatprep.subr.msk.bf16.mxu0 %vm1546_vm1, %v1267_v39 }
  0x3f   : > { %858 = vperm.xlu0 %1372, %v855_v48  }
  0x44   : > { %1272 = vmatpush3.bf16.xpose.msk.msra.mxu0 %vm1546_vm1, %v1267_v39 }
  0x45   : > { %1275 = vmatprep.subr.msk.bf16.mxu0 %vm1546_vm1, %v1273_v46 }
  0x4c   : > { %1278 = vmatpush3.bf16.xpose.msk.msra.mxu0 %vm1546_vm1, %v1273_v46 }
  0x4d   : > { %1281 = vmatprep.subr.msk.bf16.mxu0 %vm1546_vm1, %v1279_v51 }
  0x54   : > { %1284 = vmatpush3.bf16.xpose.msk.msra.mxu0 %vm1546_vm1, %v1279_v51 }
  0x5b   : > { %1151 = vmatmul.mubr.msk.f32.vlgmr.msra.gmra.mrb[0].mxu0 %vm427_vm0, %v316_v52 }
  0x5c   : > { %1153 = vmatprep.mubr.msk.f32.mxu0 %vm427_vm0, %v317_v53 }
  0x5f   : > { %1154 = vmatmul.mubr.msk.f32.gmra.mrb[2].mxu0 %vm427_vm0, %v318_v54 }
  0x60   : > { %1156 = vmatprep.mubr.msk.f32.mxu0 %vm427_vm0, %v319_v55 }
  0x63   : > { %1157 = vmatmul.mubr.msk.f32.gmra.mrb[4].mxu0 %vm427_vm0, %v320_v56 }
  0x64   : > { %1159 = vmatprep.mubr.msk.f32.mxu0 %vm427_vm0, %v321_v57 }
  0x67   : > { %1160 = vmatmul.mubr.msk.f32.gmra.mrb[6].mxu0 %vm427_vm0, %v322_v58 }
  0x68   : > { %1162 = vmatprep.mubr.msk.f32.mxu0 %vm427_vm0, %v323_v59 }
  0x6b   : > { %1163 = vmatmul.mubr.msk.f32.gmra.mrb[8].mxu0 %vm427_vm0, %v324_v60 }
  0x6c   : > { %1165 = vmatprep.mubr.msk.f32.mxu0 %vm427_vm0, %v325_v61 }
  0x6f   : > { %1166 = vmatmul.mubr.msk.f32.gmra.mrb[10].mxu0 %vm427_vm0, %v326_v62 }
  0x70   : > { %1168 = vmatprep.mubr.msk.f32.mxu0 %vm427_vm0, %v327_v63 }
  0x73   : > { %1169 = vmatmul.mubr.msk.f32.gmra.mrb[12].mxu0 %vm427_vm0, %v328_v0 }
  0x74   : > { %1171 = vmatprep.mubr.msk.f32.mxu0 %vm427_vm0, %v329_v1 }
  0x77   : > { %1172 = vmatmul.mubr.msk.f32.gmra.mrb[14].mxu0 %vm427_vm0, %v330_v2 }
  0x8e   : > { %v350_v5 = vpop.permute.xlu0 %349 }
  0x8f   : > { %v360_v4 = vpop.permute.xlu1 %359 }
  0x92   : > { %v355_v7 = vpop.permute.xlu0 %354 }
  0x93   : > { %v365_v6 = vpop.permute.xlu1 %364 }
  0x96   : > { %v370_v9 = vpop.permute.xlu0 %369 }
  0x97   : > { %v375_v8 = vpop.permute.xlu1 %374 }
  0x9a   : > { %v380_v18 = vpop.permute.xlu0 %379 }
  0x9b   : > { %v385_v15 = vpop.permute.xlu1 %384 }
  0x9e   : > { %v390_v31 = vpop.permute.xlu0 %389 }
  0x9f   : > { %v395_v28 = vpop.permute.xlu1 %394 }
  0xa2   : > { %v400_v43 = vpop.permute.xlu0 %399 }
  0xa3   : > { %v405_v40 = vpop.permute.xlu1 %404 }
  0xa6   : > { %v410_v56 = vpop.permute.xlu0 %409 }
  0xa7   : > { %v415_v53 = vpop.permute.xlu1 %414 }
  0xab   : > { %v425_v1 = vpop.permute.xlu1 %424 }
 0x12e   : > { %v1152_v10 = vpop.f32.mrb[0].mxu0 }
 0x12f   : > { %v596_v11 = vadd.f32 %v1152_v10, %v355_v7  ;;  %v590_v12 = vpop.f32.mrb[1].mxu0 }
 0x130   : > { %v591_v13 = vadd.f32 %v590_v12, %v350_v5  ;;  %v686_v12 = vld [vmem:[%s1807_s3 + $0x8] sm:$0xff] }
 0x131   : > { %v670_v14 = vmax.f32 %v596_v11, 0.0 }
 0x132   : > { %v669_v16 = vmax.f32 %v591_v13, 0.0  ;;  %v1155_v17 = vpop.f32.mrb[2].mxu0  ;;  %v687_v13 = vld [vmem:[%s1807_s3 + $0x10] sm:$0xff] }
 0x133   : > { %v606_v19 = vadd.f32 %v1155_v17, %v365_v6  ;;  %v600_v20 = vpop.f32.mrb[3].mxu0  ;;  %v691_v17 = vld [vmem:[%s1807_s3 + $0x30] sm:$0xff] }
 0x134   : > { %v601_v21 = vadd.f32 %v600_v20, %v360_v4  ;;  %v1285_v22 = vpack.c.bf16 %v670_v14, %v669_v16  ;;  %v420_v4 = vpop.permute.xlu0 %419  ;;  %v688_v14 = vld [vmem:[%s1807_s3 + $0x18] sm:$0xff]  ;;  %v690_v16 = vld [vmem:[%s1807_s3 + $0x28] sm:$0xff]  ;;  %v1441_v20 = vmov 0.0  }
 0x135   : > { %v672_v23 = vmax.f32 %v606_v19, 0.0  ;;  %v1439_v19 = vmov 0.0|0.0  }
 0x136   : > { %v671_v24 = vmax.f32 %v601_v21, 0.0  ;;  %v1158_v25 = vpop.f32.mrb[4].mxu0  ;;  %1286 = vmatprep.subr.bf16.mxu1 %v1285_v22  ;;  %v709_v21 = vpop.permute.xlu1 %708 }
 0x137   : > { %v616_v26 = vadd.f32 %v1158_v25, %v375_v8  ;;  %v610_v27 = vpop.f32.mrb[5].mxu0  ;;  %1288 = vmatpush3.bf16.msra.mxu1 %v1285_v22 }
 0x138   : > { %v1289_v29 = vpack.c.bf16 %v672_v23, %v671_v24  ;;  %v611_v30 = vadd.f32 %v610_v27, %v370_v9  ;;  %v704_v22 = vpop.permute.xlu0 %703 }
 0x139   : > { %v674_v32 = vmax.f32 %v616_v26, 0.0 }
 0x13a   : > { %v673_v33 = vmax.f32 %v611_v30, 0.0  ;;  %v1161_v34 = vpop.f32.mrb[6].mxu0  ;;  %1290 = vmatprep.subr.bf16.mxu1 %v1289_v29  ;;  %v719_v23 = vpop.permute.xlu1 %718 }
 0x13b   : > { %v626_v35 = vadd.f32 %v1161_v34, %v385_v15  ;;  %v620_v36 = vpop.f32.mrb[7].mxu0  ;;  %1292 = vmatpush3.bf16.msra.mxu1 %v1289_v29  ;;  %v689_v15 = vld [vmem:[%s1807_s3 + $0x20] sm:$0xff] }
 0x13c   : > { %v1293_v37 = vpack.c.bf16 %v674_v32, %v673_v33  ;;  %v621_v38 = vadd.f32 %v620_v36, %v380_v18  ;;  %v692_v18 = vld [vmem:[%s1807_s3 + $0x38] sm:$0xff]  ;;  %v714_v25 = vpop.permute.xlu0 %713 }
 0x13d   : > { %v676_v39 = vmax.f32 %v626_v35, 0.0 }
 0x13e   : > { %v675_v41 = vmax.f32 %v621_v38, 0.0  ;;  %v1164_v42 = vpop.f32.mrb[8].mxu0  ;;  %1294 = vmatprep.subr.bf16.mxu1 %v1293_v37  ;;  %v729_v34 = vpop.permute.xlu1 %728 }
 0x13f   : > { %v636_v44 = vadd.f32 %v1164_v42, %v395_v28  ;;  %v630_v45 = vpop.f32.mrb[9].mxu0  ;;  %1296 = vmatpush3.bf16.msra.mxu1 %v1293_v37 }
 0x140   : > { %v1297_v46 = vpack.c.bf16 %v676_v39, %v675_v41  ;;  %v631_v47 = vadd.f32 %v630_v45, %v390_v31  ;;  %v724_v37 = vpop.permute.xlu0 %723 }
 0x141   : > { %v678_v48 = vmax.f32 %v636_v44, 0.0 }
 0x142   : > { %v677_v49 = vmax.f32 %v631_v47, 0.0  ;;  %v1167_v50 = vpop.f32.mrb[10].mxu0  ;;  %1298 = vmatprep.subr.bf16.mxu1 %v1297_v46 }
 0x143   : > { %v646_v51 = vadd.f32 %v1167_v50, %v405_v40  ;;  %v640_v52 = vpop.f32.mrb[11].mxu0  ;;  %1300 = vmatpush3.bf16.msra.mxu1 %v1297_v46  ;;  %v739_v46 = vpop.permute.xlu1 %738 }
 0x144   : > { %v1301_v54 = vpack.c.bf16 %v678_v48, %v677_v49  ;;  %v641_v55 = vadd.f32 %v640_v52, %v400_v43  ;;  %v734_v49 = vpop.permute.xlu0 %733 }
 0x145   : > { %v680_v57 = vmax.f32 %v646_v51, 0.0 }
 0x146   : > { %v679_v58 = vmax.f32 %v641_v55, 0.0  ;;  %v1170_v59 = vpop.f32.mrb[12].mxu0  ;;  %1302 = vmatprep.subr.bf16.mxu1 %v1301_v54 }
 0x147   : > { %v656_v60 = vadd.f32 %v1170_v59, %v415_v53  ;;  %v650_v61 = vpop.f32.mrb[13].mxu0  ;;  %1304 = vmatpush3.bf16.msra.mxu1 %v1301_v54 }
 0x148   : > { %v1305_v62 = vpack.c.bf16 %v680_v57, %v679_v58  ;;  %v651_v63 = vadd.f32 %v650_v61, %v410_v56  ;;  %v854_v57 = vld [vmem:[%s1809_s5] sm:$0x3]  ;;  %v859_v58 = vpop.permute.xlu0 %858 }
 0x149   : > { %v682_v0 = vmax.f32 %v656_v60, 0.0 }
 0x14a   : > { %v681_v2 = vmax.f32 %v651_v63, 0.0  ;;  %v1173_v3 = vpop.f32.mrb[14].mxu0  ;;  %1306 = vmatprep.subr.bf16.mxu1 %v1305_v62 }
 0x14b   : > { %v666_v5 = vadd.f32 %v1173_v3, %v425_v1  ;;  %v660_v6 = vpop.f32.mrb[15].mxu0  ;;  %1308 = vmatpush3.bf16.msra.mxu1 %v1305_v62 }
 0x14c   : > { %v1309_v7 = vpack.c.bf16 %v682_v0, %v681_v2  ;;  %v661_v8 = vadd.f32 %v660_v6, %v420_v4 }
 0x14d   : > { %v684_v9 = vmax.f32 %v666_v5, 0.0 }
 0x14e   : > { %v683_v10 = vmax.f32 %v661_v8, 0.0  ;;  %1310 = vmatprep.subr.bf16.mxu1 %v1309_v7 }
 0x14f   : > { %1312 = vmatpush3.bf16.msra.mxu1 %v1309_v7 }
 0x150   : > { %v1313_v11 = vpack.c.bf16 %v684_v9, %v683_v10 }
 0x152   : > { %1314 = vmatprep.subr.bf16.mxu1 %v1313_v11 }
 0x153   : > { %1316 = vmatpush3.bf16.msra.mxu1 %v1313_v11 }
 0x154   : > { %1317 = vmatprep.subr.bf16.mxu1 %v1439_v19 }
 0x156   : > { %1207 = vmatmul.mubr.f32.vlgmr.msra.gmra.mrb[0].mxu1 %v686_v12 }
 0x157   : > { %1209 = vmatprep.mubr.f32.mxu1 %v687_v13 }
 0x15a   : > { %1210 = vmatmul.mubr.f32.gmra.mrb[2].mxu1 %v688_v14 }
 0x15b   : > { %1212 = vmatprep.mubr.f32.mxu1 %v689_v15 }
 0x15e   : > { %1213 = vmatmul.mubr.f32.gmra.mrb[4].mxu1 %v690_v16 }
 0x15f   : > { %1215 = vmatprep.mubr.f32.mxu1 %v691_v17 }
 0x162   : > { %1216 = vmatmul.mubr.f32.gmra.mrb[6].mxu1 %v692_v18 }
 0x163   : > { %1234 = vmatprep.mubr.msk.f32.mxu1 %vm1440_vm2, %v1441_v20 }
 0x229   : > { %v1208_v24 = vpop.f32.mrb[0].mxu1 }
 0x22a   : > { %v813_v26 = vadd.f32 %v1208_v24, %v709_v21  ;;  %v807_v27 = vpop.f32.mrb[1].mxu1 }
 0x22b   : > { %v808_v28 = vadd.f32 %v807_v27, %v704_v22 }
 0x22c   : > { %v847_v29 = vmax.f32 %v813_v26, 0.0 }
 0x22d   : > { %v846_v30 = vmax.f32 %v808_v28, 0.0  ;;  %v1211_v31 = vpop.f32.mrb[2].mxu1 }
 0x22e   : > { %v823_v32 = vadd.f32 %v1211_v31, %v719_v23  ;;  %v817_v33 = vpop.f32.mrb[3].mxu1 }
 0x22f   : > { %v1318_v35 = vpack.c.bf16 %v847_v29, %v846_v30  ;;  %v818_v36 = vadd.f32 %v817_v33, %v714_v25 }
 0x230   : > { %v849_v38 = vmax.f32 %v823_v32, 0.0 }
 0x231   : > { %v848_v39 = vmax.f32 %v818_v36, 0.0  ;;  %v1214_v40 = vpop.f32.mrb[4].mxu1  ;;  %1319 = vmatpush3.bf16.msra.mxu1 %v1318_v35 }
 0x232   : > { %v833_v41 = vadd.f32 %v1214_v40, %v729_v34  ;;  %v827_v42 = vpop.f32.mrb[5].mxu1  ;;  %1320 = vmatprep.subr.bf16.mxu1 %v1439_v19 }
 0x233   : > { %v1321_v43 = vpack.c.bf16 %v849_v38, %v848_v39  ;;  %v828_v44 = vadd.f32 %v827_v42, %v724_v37 }
 0x234   : > { %v851_v45 = vmax.f32 %v833_v41, 0.0 }
 0x235   : > { %v850_v47 = vmax.f32 %v828_v44, 0.0  ;;  %v1217_v48 = vpop.f32.mrb[6].mxu1  ;;  %1322 = vmatpush3.bf16.msra.mxu1 %v1321_v43 }
 0x236   : > { %v843_v50 = vadd.f32 %v1217_v48, %v739_v46  ;;  %v837_v51 = vpop.f32.mrb[7].mxu1  ;;  %1323 = vmatprep.subr.bf16.mxu1 %v1439_v19 }
 0x237   : > { %v1324_v52 = vpack.c.bf16 %v851_v45, %v850_v47  ;;  %v838_v53 = vadd.f32 %v837_v51, %v734_v49 }
 0x238   : > { %v853_v54 = vmax.f32 %v843_v50, 0.0 }
 0x239   : > { %v852_v55 = vmax.f32 %v838_v53, 0.0  ;;  %1325 = vmatpush3.bf16.msra.mxu1 %v1324_v52 }
 0x23a   : > { %1326 = vmatprep.subr.bf16.mxu1 %v1439_v19 }
 0x23b   : > { %v1327_v56 = vpack.c.bf16 %v853_v54, %v852_v55 }
 0x23d   : > { %1328 = vmatpush3.bf16.msra.mxu1 %v1327_v56 }
 0x240   : > { %1235 = vmatmul.mubr.msk.f32.vlgmr.msra.gmra.mrb[8].mxu1 %vm861_vm3, %v854_v57 }
 0x313   : > { %v931_v59 = vpop.f32.mrb[8].mxu1 }
 0x314   : > { %v932_v60 = vadd.f32 %v931_v59, %v859_v58  ;;  %v1236_v61 = vpop.f32.mrb[9].mxu1 }
 0x316   : > { %935 = vst [vmem:[%s284_s9] sm:$0x3] %v932_v60 }
 0x317   : > { %1387 = shalt.err (!%p1384_p3)
}
 0x318   : > { %s1388_s21 = scalar_lea.hbm %s1762_s16, 32  ;;  %s1392_s29 = scalar_lea.hbm %s1811_s7, 64 }
 0x319   : > { %p1389_p4 = scmp.ne.s32.totalorder %s1762_s16, %s1388_s21  ;;  %p1393_p9 = scmp.lt.u32.totalorder %s1762_s16, %s1811_s7 }
 0x31a   : > { %p1394_p10 = scmp.lt.u32.totalorder %s1392_s29, %s1388_s21  ;;  %p1396_p12 = scmp.lt.u32.totalorder %s1388_s21, %s1762_s16 }
 0x31b   : > { %p1390_p7 = pnand %p1389_p4, %p1521_p5 }
 0x31c   : > { %p1395_p11 = por %p1394_p10, %p1393_p9 }
 0x31d   : > { %p1391_p8 = pneg %p1390_p7 }
 0x31e   : > { %p1397_p13 = por %p1396_p12, %p1395_p11 }
 0x320   : > { %p1398_p0 = pnand %p1397_p13, %p1391_p8 }
 0x322   : > { %1401 = shalt.err (!%p1398_p0)
}
 0x323   : > { %1329 = dma.vmem_to_hbm [thread:$0]  (%p1521_p5), %s1764_s13, 32, %s1762_s16, %s937_s17  }
 0x324 PF: > { %p1335_p1 = scmp.ge.s32.totalorder %s1436_s27, 2  ;;  %s962_s14 = sand.u32 1, %s1424_s24  }
 0x325   : > { %s963_s15 = scalar_lea.sflag [#allocation3], %s962_s14 }
 0x326   : > { %p1332_p2 = pnand %p1335_p1, %p1525_p6 }
 0x328   : > { %1419 = dma.done.wait (!%p1332_p2), %s963_s15, 32  }
 0x329   : > { %1421 = vsyncadd (!%p1332_p2), %s963_s15, 4294967264  ;;  %p17_p3 = scmp.ge.s32.totalorder %s1508_s30, 4   ;;  %s1816_s24 = smov %s1428_s25 }
 0x32a   : > { %s1817_s25 = smov %s1432_s26  ;;  %s1818_s26 = smov %s1519_s10 }
 0x32b   : > { %s1819_s27 = smov %s1508_s30  ;;  %19 = sbr.rel (!%p17_p3) target bundleno = 3 (0x3), region = 83 }
 0x332   :  { %968 = vsyncpa [#allocation3], 1 }
 0x333   :  { %970 = vsyncpa [#allocation3 + $0x1], 1 }

</bundles_post_ra>
